<compile_context>
chip_gen: v7x
topology: tpu7x:2x2x1
jax: 0.10.0
libtpu: 0.0.40
codegen_flags: <defaults>
</compile_context>

<pallas_src>
import numpy as np
import jax
import jax.numpy as jnp
from jax.experimental import pallas as pl
from jax.experimental.pallas import tpu as pltpu  # noqa: F401  (not required at this size)

C_NUM = 32     # EEG channels (adjacency in the source is 32x32)
K_NUM = 5      # graph_convolution_kernel
T_LEN = 128    # time samples
BATCH = 2


# ----------------------------- Pallas kernel -----------------------------

def fused_gcn_kernel(x_ref, gk_ref, w1t_ref, b1_ref, w2t_ref, b2_ref, o_ref):
    # x_ref : (B, C, T)   input EEG (B=2, C=32, T=128)
    # gk_ref: (K*C, C)    spectral graph kernel, row r = (k, i), col = j
    # o_ref : (B, K*C, T) lane-dense output slab (free-reshaped to (B, K, C, T) outside)

    # ---- channel attention prologue (tiny; ~1 KFLOP) ----
    # TODO(synk): the original nn.Sequential(AdaptiveAvgPool2d(1), Linear(C,4), ...) is
    # shape-inconsistent as written in PyTorch; implemented the intended per-channel pooling.
    pooled = jnp.mean(x_ref[...], axis=2)                                    # (B, C)
    h = jnp.tanh(jnp.dot(pooled, w1t_ref[...],
                         preferred_element_type=jnp.float32) + b1_ref[...])  # (B, 4)
    att = jnp.dot(h, w2t_ref[...],
                  preferred_element_type=jnp.float32) + b2_ref[...]          # (B, C)
    cha = jnp.mean(att, axis=0, keepdims=True)                               # (1, C)

    # ---- graph convolution ----
    # Scale gk's columns by cha once per call (keeping the scale on gk avoids the awkward
    # (1,C)->(C,1) relayout that scaling x's rows would require; both are a handful of vregs).
    adj = cha * gk_ref[...]                                                  # (K*C, C)

    # Per-batch MXU matmul + fused ReLU, stored directly in output layout (no wrapper transposes).
    for b in range(x_ref.shape[0]):                                          # static unroll, B=2
        y = jnp.dot(adj, x_ref[b], preferred_element_type=jnp.float32)       # (K*C, T)
        o_ref[b] = jnp.maximum(y, 0.0)                                       # ReLU


# ------------------------------- wrapper -----------------------------------

def my_graph_convolution(x_nchw, graph_kernel, w1, b1, w2, b2):
    B, one, C, T = x_nchw.shape
    assert one == 1
    K = graph_kernel.shape[0]

    x = x_nchw.reshape(B, C, T).astype(jnp.float32)                   # (B, C, T) -- free reshape
    gk2 = jnp.asarray(graph_kernel, dtype=jnp.float32).reshape(K * C, C)

    # present MLP weights transposed so the kernel does plain row-major matmuls
    w1t = jnp.asarray(w1).T.astype(jnp.float32)                       # (C, 4)
    w2t = jnp.asarray(w2).T.astype(jnp.float32)                       # (4, C)
    b1r = jnp.asarray(b1).reshape(1, -1).astype(jnp.float32)          # (1, 4)
    b2r = jnp.asarray(b2).reshape(1, C).astype(jnp.float32)           # (1, C)

    flops = 2 * B * (K * C) * C * T + 2 * B * C * 4 * 2 + K * C * C
    bytes_accessed = 4 * (B * C * T + K * C * C + B * K * C * T + C * 4 + 4 + 4 * C + C)

    # single fused kernel, single grid step: everything resident in VMEM at once
    y = pl.pallas_call(
        fused_gcn_kernel,
        out_shape=jax.ShapeDtypeStruct((B, K * C, T), jnp.float32),
        cost_estimate=pl.CostEstimate(flops=flops, transcendentals=4 * B,
                                      bytes_accessed=bytes_accessed),
    )(x, gk2, w1t, b1r, w2t, b2r)

    # (B, K*C, T) -> (B, K, C, T): metadata-only reshape, no data movement
    return y.reshape(B, K, C, T)


# --------------------------- parameter building ----------------------------

def build_graph_kernel(key, C, K):
    # TODO(synk): edges.npy is unavailable; deterministic synthetic edge list (ring + skips)
    # replaces it, and the source's np.eye(64) Laplacian bug is fixed to np.eye(C).
    edges = [(i, (i + 1) % C) for i in range(C)] + [(i, (i + 5) % C) for i in range(C)]
    adjacency = np.zeros((C, C), dtype=np.float64)
    for a, b in edges:
        adjacency[a, b] = 1.0
        adjacency[b, a] = 1.0
    adjacency = np.sign(adjacency + np.eye(C))
    laplacian = np.sum(adjacency, axis=0) * np.eye(C) - adjacency
    # eigh (symmetric) for deterministic, real eigenvectors
    _, e_vets = np.linalg.eigh(laplacian)
    e_vets = e_vets.astype(np.float32)                               # (C, C)

    gk_param = np.asarray(jax.random.normal(key, (K, 1, C), dtype=jnp.float32))
    gk_diag = gk_param * np.eye(C, dtype=np.float32)                 # (K, C, C) diagonal stack
    gk = np.matmul(np.matmul(e_vets, gk_diag), e_vets.T)             # (K, C, C)
    return jnp.asarray(gk, dtype=jnp.float32)


# ------------------------------ reference ----------------------------------

def reference(x_nchw, graph_kernel, w1, b1, w2, b2):
    B, _, C, T = x_nchw.shape
    x = x_nchw.reshape(B, C, T)
    pooled = jnp.mean(x, axis=2)                      # (B, C)
    h = jnp.tanh(pooled @ w1.T + b1)                  # (B, 4)
    att = h @ w2.T + b2                               # (B, C)
    cha = jnp.mean(att, axis=0)                       # (C,)
    adj = cha * graph_kernel                          # (K, C, C), columns scaled
    y = jnp.einsum('kij,bjt->bkit', adj, x)           # (B, K, C, T)
    return jnp.maximum(y, 0.0)


if __name__ == "__main__":
    key = jax.random.PRNGKey(0)
    k_gk, k_x, k_w1, k_b1, k_w2, k_b2 = jax.random.split(key, 6)

    graph_kernel = build_graph_kernel(k_gk, C_NUM, K_NUM)            # (K, C, C)

    # channel-attention MLP params: Linear(C, 4) then Linear(4, C)
    w1 = 0.1 * jax.random.normal(k_w1, (4, C_NUM), dtype=jnp.float32)
    b1 = 0.1 * jax.random.normal(k_b1, (4,), dtype=jnp.float32)
    w2 = 0.1 * jax.random.normal(k_w2, (C_NUM, 4), dtype=jnp.float32)
    b2 = 0.1 * jax.random.normal(k_b2, (C_NUM,), dtype=jnp.float32)

    x = jax.random.normal(k_x, (BATCH, 1, C_NUM, T_LEN), dtype=jnp.float32)

    out = my_graph_convolution(x, graph_kernel, w1, b1, w2, b2)
    out = jax.block_until_ready(out)

    ref = reference(x, graph_kernel, w1, b1, w2, b2)
    np.testing.assert_allclose(np.asarray(out), np.asarray(ref), rtol=1e-4, atol=1e-4)

    print("KERNEL_OK")
</pallas_src>

<mosaic_0001>
module attributes {stable_mosaic.version = 11 : i64} {
  func.func @fused_gcn_kernel(%arg0: memref<2x32x128xf32, #tpu.memory_space<vmem>>, %arg1: memref<160x32xf32, #tpu.memory_space<vmem>>, %arg2: memref<32x4xf32, #tpu.memory_space<vmem>>, %arg3: memref<1x4xf32, #tpu.memory_space<vmem>>, %arg4: memref<4x32xf32, #tpu.memory_space<vmem>>, %arg5: memref<1x32xf32, #tpu.memory_space<vmem>>, %arg6: memref<2x160x128xf32, #tpu.memory_space<vmem>>) attributes {dimension_semantics = [], scalar_prefetch = 0 : i64, scratch_operands = 0 : i64, tpu.core_type = #tpu.core_type<tc>} {
    %c0 = arith.constant 0 : index
    %c0_0 = arith.constant 0 : index
    %c0_1 = arith.constant 0 : index
    %0 = vector.load %arg0[%c0, %c0_0, %c0_1] : memref<2x32x128xf32, #tpu.memory_space<vmem>>, vector<2x32x128xf32>
    %cst = arith.constant dense<0.000000e+00> : vector<2x32xf32>
    %1 = vector.multi_reduction <add>, %0, %cst [2] : vector<2x32x128xf32> to vector<2x32xf32>
    %cst_2 = arith.constant 1.280000e+02 : f32
    %2 = vector.broadcast %cst_2 : f32 to vector<2x32xf32>
    %3 = arith.divf %1, %2 : vector<2x32xf32>
    %c0_3 = arith.constant 0 : index
    %c0_4 = arith.constant 0 : index
    %4 = vector.load %arg2[%c0_3, %c0_4] : memref<32x4xf32, #tpu.memory_space<vmem>>, vector<32x4xf32>
    %cst_5 = arith.constant dense<0.000000e+00> : vector<2x4xf32>
    %5 = tpu.matmul %3, %4, %cst_5 {dimension_numbers = #tpu.dot_dimension_numbers<[1], [0], [0], [1], [0, 0, 1, 1], [], []>} : vector<2x32xf32>, vector<32x4xf32>, vector<2x4xf32> -> vector<2x4xf32>
    %c0_6 = arith.constant 0 : index
    %c0_7 = arith.constant 0 : index
    %6 = vector.load %arg3[%c0_6, %c0_7] : memref<1x4xf32, #tpu.memory_space<vmem>>, vector<1x4xf32>
    %7 = vector.broadcast %6 : vector<1x4xf32> to vector<2x4xf32>
    %8 = arith.addf %5, %7 : vector<2x4xf32>
    %9 = math.tanh %8 : vector<2x4xf32>
    %c0_8 = arith.constant 0 : index
    %c0_9 = arith.constant 0 : index
    %10 = vector.load %arg4[%c0_8, %c0_9] : memref<4x32xf32, #tpu.memory_space<vmem>>, vector<4x32xf32>
    %cst_10 = arith.constant dense<0.000000e+00> : vector<2x32xf32>
    %11 = tpu.matmul %9, %10, %cst_10 {dimension_numbers = #tpu.dot_dimension_numbers<[1], [0], [0], [1], [0, 0, 1, 1], [], []>} : vector<2x4xf32>, vector<4x32xf32>, vector<2x32xf32> -> vector<2x32xf32>
    %c0_11 = arith.constant 0 : index
    %c0_12 = arith.constant 0 : index
    %12 = vector.load %arg5[%c0_11, %c0_12] : memref<1x32xf32, #tpu.memory_space<vmem>>, vector<1x32xf32>
    %13 = vector.broadcast %12 : vector<1x32xf32> to vector<2x32xf32>
    %14 = arith.addf %11, %13 : vector<2x32xf32>
    %cst_13 = arith.constant dense<0.000000e+00> : vector<32xf32>
    %15 = vector.multi_reduction <add>, %14, %cst_13 [0] : vector<2x32xf32> to vector<32xf32>
    %16 = vector.shape_cast %15 : vector<32xf32> to vector<1x32xf32>
    %cst_14 = arith.constant 2.000000e+00 : f32
    %17 = vector.broadcast %cst_14 : f32 to vector<1x32xf32>
    %18 = arith.divf %16, %17 : vector<1x32xf32>
    %c0_15 = arith.constant 0 : index
    %c0_16 = arith.constant 0 : index
    %19 = vector.load %arg1[%c0_15, %c0_16] : memref<160x32xf32, #tpu.memory_space<vmem>>, vector<160x32xf32>
    %20 = vector.broadcast %18 : vector<1x32xf32> to vector<160x32xf32>
    %21 = arith.mulf %20, %19 : vector<160x32xf32>
    %c0_17 = arith.constant 0 : index
    %c0_18 = arith.constant 0 : index
    %c0_19 = arith.constant 0 : index
    %22 = vector.load %arg0[%c0_17, %c0_18, %c0_19] : memref<2x32x128xf32, #tpu.memory_space<vmem>>, vector<1x32x128xf32>
    %23 = vector.shape_cast %22 : vector<1x32x128xf32> to vector<32x128xf32>
    %cst_20 = arith.constant dense<0.000000e+00> : vector<160x128xf32>
    %24 = tpu.matmul %21, %23, %cst_20 {dimension_numbers = #tpu.dot_dimension_numbers<[1], [0], [0], [1], [0, 0, 1, 1], [], []>} : vector<160x32xf32>, vector<32x128xf32>, vector<160x128xf32> -> vector<160x128xf32>
    %cst_21 = arith.constant 0.000000e+00 : f32
    %25 = vector.broadcast %cst_21 : f32 to vector<160x128xf32>
    %26 = arith.maximumf %24, %25 : vector<160x128xf32>
    %c0_22 = arith.constant 0 : index
    %c0_23 = arith.constant 0 : index
    %c0_24 = arith.constant 0 : index
    %27 = vector.load %arg6[%c0_22, %c0_23, %c0_24] : memref<2x160x128xf32, #tpu.memory_space<vmem>>, vector<1x160x128xf32>
    %28 = vector.shape_cast %27 : vector<1x160x128xf32> to vector<160x128xf32>
    %29 = vector.shape_cast %26 : vector<160x128xf32> to vector<1x160x128xf32>
    tpu.vector_store %arg6[%c0_22, %c0_23, %c0_24], %29 {strides = array<i32>} : memref<2x160x128xf32, #tpu.memory_space<vmem>>, vector<1x160x128xf32>,
    %c1 = arith.constant 1 : index
    %c0_25 = arith.constant 0 : index
    %c0_26 = arith.constant 0 : index
    %30 = vector.load %arg0[%c1, %c0_25, %c0_26] : memref<2x32x128xf32, #tpu.memory_space<vmem>>, vector<1x32x128xf32>
    %31 = vector.shape_cast %30 : vector<1x32x128xf32> to vector<32x128xf32>
    %cst_27 = arith.constant dense<0.000000e+00> : vector<160x128xf32>
    %32 = tpu.matmul %21, %31, %cst_27 {dimension_numbers = #tpu.dot_dimension_numbers<[1], [0], [0], [1], [0, 0, 1, 1], [], []>} : vector<160x32xf32>, vector<32x128xf32>, vector<160x128xf32> -> vector<160x128xf32>
    %cst_28 = arith.constant 0.000000e+00 : f32
    %33 = vector.broadcast %cst_28 : f32 to vector<160x128xf32>
    %34 = arith.maximumf %32, %33 : vector<160x128xf32>
    %c1_29 = arith.constant 1 : index
    %c0_30 = arith.constant 0 : index
    %c0_31 = arith.constant 0 : index
    %35 = vector.load %arg6[%c1_29, %c0_30, %c0_31] : memref<2x160x128xf32, #tpu.memory_space<vmem>>, vector<1x160x128xf32>
    %36 = vector.shape_cast %35 : vector<1x160x128xf32> to vector<160x128xf32>
    %37 = vector.shape_cast %34 : vector<160x128xf32> to vector<1x160x128xf32>
    tpu.vector_store %arg6[%c1_29, %c0_30, %c0_31], %37 {strides = array<i32>} : memref<2x160x128xf32, #tpu.memory_space<vmem>>, vector<1x160x128xf32>,
    return
  }
}

</mosaic_0001>

<bundles_post_ra>
// kernel: tpu_custom_call.1
= control target key start
LH: loop header
LB: loop body
LE: loop exit
PB: predicated region body
PF: predicated region fallthrough
CT: control target
= control target key end

     0   :  { %s1335_s0 = inlined_call_operand.vmem [shape: f32[2,32,128], index: 0, kind: input, shape index: {}]   ;;  %s1336_s1 = inlined_call_operand.vmem [shape: f32[160,32], index: 1, kind: input, shape index: {}]   ;;  %s1337_s2 = inlined_call_operand.vmem [shape: f32[32,4], index: 2, kind: input, shape index: {}]   ;;  %s1338_s3 = inlined_call_operand.vmem [shape: f32[1,4], index: 3, kind: input, shape index: {}]   ;;  %s1339_s4 = inlined_call_operand.vmem [shape: f32[4,32], index: 4, kind: input, shape index: {}]   ;;  %s1340_s5 = inlined_call_operand.vmem [shape: f32[1,32], index: 5, kind: input, shape index: {}]   ;;  %s1341_s6 = inlined_call_operand.hbm [shape: f32[2,160,128], index: 6, kind: output, shape index: {}]  }
   0x1   :  { %v1124_v0 = vld [vmem:[%s1335_s0 + $0x20] sm:$0xff]  ;;  %v1136_v2 = vld [vmem:[%s1335_s0 + $0x28] sm:$0xff] }
   0x2   :  { %v1129_v1 = vld [vmem:[%s1335_s0] sm:$0xff]  ;;  %40 = vadd.xlane.f32.xlu1 %v1124_v0  ;;  %v1141_v3 = vld [vmem:[%s1335_s0 + $0x8] sm:$0xff] }
   0x3   :  { %32 = vadd.xlane.f32.xlu0 %v1129_v1 }
   0x4   :  { %11 = vsyncpa [#allocation3], 0  ;;  %v1148_v4 = vld [vmem:[%s1335_s0 + $0x30] sm:$0xff]  ;;  %v1160_v6 = vld [vmem:[%s1335_s0 + $0x38] sm:$0xff]  ;;  %v1080_v11 = vmov 0.0|0.0   ;;  %vm1081_vm0 = vmmov 0   ;;  %v76_v16 = vlaneseq  ;;  %v1032_v63 = vpack.c.bf16 %v1141_v3, %v1129_v1 }
   0x5   :  { %v1153_v5 = vld [vmem:[%s1335_s0 + $0x10] sm:$0xff]  ;;  %v1165_v7 = vld [vmem:[%s1335_s0 + $0x18] sm:$0xff]  ;;  %v57_v8 = vld [vmem:[%s1337_s2] sm:$0xff]  ;;  %1026 = vmatprep.subr.bf16.mxu0 %v1080_v11  ;;  %v1082_v15 = vmov 0.0   ;;  %vm87_vm1 = vcmask 130112   ;;  %vm94_vm2 = vcmask 195712  }
   0x6   :  { %42 = vadd.xlane.f32.xlu1 %v1136_v2  ;;  %v58_v9 = vld [vmem:[%s1337_s2 + $0x8] sm:$0xff]  ;;  %v59_v12 = vld [vmem:[%s1337_s2 + $0x10] sm:$0xff]  ;;  %v60_v13 = vld [vmem:[%s1337_s2 + $0x18] sm:$0xff]  ;;  %942 = vmatprep.mubr.msk.f32.mxu0 %vm1081_vm0, %v1082_v15  ;;  %v77_v19 = vand.u32 127, %v76_v16  ;;  %v79_v21 = vshrl.u32 %v76_v16, 7  ;;  %vm101_vm3 = vcmask 261312  }
   0x7   :  { %34 = vadd.xlane.f32.xlu0 %v1141_v3  ;;  %v1027_v10 = vpack.c.bf16 %v58_v9, %v57_v8  ;;  %v1030_v14 = vpack.c.bf16 %v60_v13, %v59_v12  ;;  %945 = vmatprep.subr.mxu1 %v1082_v15  ;;  %vm122_vm4 = vcmask 1041409   ;;  %vm124_vm5 = vcmask 261120   ;;  %v198_v57 = vld [vmem:[%s1339_s4] sm:$0xf] }
   0x8   :  { %947 = vmatprep.mubr.msk.f32.mxu1 %vm1081_vm0, %v1082_v15  ;;  %v82_v20 = vadd.s32 4294967288, %v77_v19  ;;  %v89_v24 = vadd.s32 4294967280, %v77_v19  ;;  %v96_v28 = vadd.s32 4294967272, %v77_v19  ;;  %v80_v29 = vsub.s32 %v77_v19, %v79_v21  ;;  %v830_v58 = vld [vmem:[%s1338_s3] ss:$0 sm:$0xff] }
   0x9   :  { %1028 = vmatpush3.bf16.msra.mxu0 %v1027_v10  ;;  %vm210_vm6 = vcmask 1043456   ;;  %vm206_vm7 = vcmask 31744   ;;  %v1040_v8 = vpack.c.bf16 %v1136_v2, %v1124_v0  ;;  %v1036_v9 = vpack.c.bf16 %v1165_v7, %v1153_v5  ;;  %v832_v1 = vld [vmem:[%s1340_s5] ss:$0 sm:$0xff] }
   0xa   :  { %44 = vadd.xlane.f32.xlu1 %v1148_v4  ;;  %1029 = vmatprep.subr.bf16.mxu0 %v1080_v11  ;;  %v85_v25 = vsub.s32 %v82_v20, %v79_v21  ;;  %v92_v30 = vsub.s32 %v89_v24, %v79_v21  ;;  %v99_v39 = vsub.s32 %v96_v28, %v79_v21  ;;  %vm284_vm8 = vcmask 254976   ;;  %v297_v21 = vld [vmem:[%s1336_s1 + $0x18] sm:$0xff] }
   0xb   :  { %36 = vadd.xlane.f32.xlu0 %v1153_v5  ;;  %946 = vmatpush3.msk.msra.mxu1 %vm210_vm6, %v198_v57  ;;  %v1044_v10 = vpack.c.bf16 %v1160_v6, %v1148_v4  ;;  %v294_v4 = vld [vmem:[%s1336_s1] sm:$0xff] }
   0xc   :  { %1033 = vmatprep.subr.bf16.mxu1 %v1032_v63 }
   0xd   :  { %1031 = vmatpush3.bf16.msra.mxu0 %v1030_v14 }
   0xe   :  { %46 = vadd.xlane.f32.xlu1 %v1160_v6  ;;  %1041 = vmatprep.subr.bf16.mxu0 %v1040_v8  ;;  %v295_v6 = vld [vmem:[%s1336_s1 + $0x8] sm:$0xff] }
   0xf   :  { %38 = vadd.xlane.f32.xlu0 %v1165_v7 }
  0x8f   :  { %v41_v17 = vpop.xlane.xlu1 %40 }
  0x90   :  { %v33_v18 = vpop.xlane.xlu0 %32  ;;  %v53_v33 = vmul.f32 0.0078125, %v41_v17  ;;  %v296_v17 = vld [vmem:[%s1336_s1 + $0x10] sm:$0xff] }
  0x91   :  { %v49_v34 = vmul.f32 0.0078125, %v33_v18 }
  0x92   :  { %v106_v44 = vrot.slane %v53_v33, %v80_v29  ;;  %v303_v33 = vld [vmem:[%s1336_s1 + $0x48] sm:$0xff] }
  0x93   :  { %v43_v22 = vpop.xlane.xlu1 %42  ;;  %v81_v45 = vrot.slane %v49_v34, %v80_v29  ;;  %v301_v29 = vld [vmem:[%s1336_s1 + $0x38] sm:$0xff]  ;;  %v304_v34 = vld [vmem:[%s1336_s1 + $0x50] sm:$0xff] }
  0x94   :  { %v35_v23 = vpop.xlane.xlu0 %34  ;;  %v54_v26 = vmul.f32 0.0078125, %v43_v22  ;;  %v298_v22 = vld [vmem:[%s1336_s1 + $0x20] sm:$0xff] }
  0x95   :  { %v50_v27 = vmul.f32 0.0078125, %v35_v23 }
  0x96   :  { %v110_v37 = vrot.slane %v54_v26, %v85_v25  ;;  %v300_v26 = vld [vmem:[%s1336_s1 + $0x30] sm:$0xff] }
  0x97   :  { %v45_v31 = vpop.xlane.xlu1 %44  ;;  %v86_v38 = vrot.slane %v50_v27, %v85_v25  ;;  %v299_v25 = vld [vmem:[%s1336_s1 + $0x28] sm:$0xff] }
  0x98   :  { %v37_v32 = vpop.xlane.xlu0 %36  ;;  %v55_v35 = vmul.f32 0.0078125, %v45_v31  ;;  %v111_v48 = vsel %vm87_vm1, %v110_v37, %v106_v44  ;;  %v305_v37 = vld [vmem:[%s1336_s1 + $0x58] sm:$0xff] }
  0x99   :  { %v51_v36 = vmul.f32 0.0078125, %v37_v32  ;;  %v88_v49 = vsel %vm87_vm1, %v86_v38, %v81_v45  ;;  %v306_v38 = vld [vmem:[%s1336_s1 + $0x60] sm:$0xff]  ;;  %v309_v45 = vld [vmem:[%s1336_s1 + $0x78] sm:$0xff] }
  0x9a   :  { %v115_v40 = vrot.slane %v55_v35, %v92_v30 }
  0x9b   :  { %v93_v41 = vrot.slane %v51_v36, %v92_v30  ;;  %v47_v42 = vpop.xlane.xlu1 %46  ;;  %v302_v30 = vld [vmem:[%s1336_s1 + $0x40] sm:$0xff] }
  0x9c   :  { %v39_v43 = vpop.xlane.xlu0 %38  ;;  %v56_v46 = vmul.f32 0.0078125, %v47_v42  ;;  %v116_v52 = vsel %vm94_vm2, %v115_v40, %v111_v48  ;;  %v308_v42 = vld [vmem:[%s1336_s1 + $0x70] sm:$0xff] }
  0x9d   :  { %v52_v47 = vmul.f32 0.0078125, %v39_v43  ;;  %v95_v53 = vsel %vm94_vm2, %v93_v41, %v88_v49  ;;  %v307_v41 = vld [vmem:[%s1336_s1 + $0x68] sm:$0xff] }
  0x9e   :  { %v120_v50 = vrot.slane %v56_v46, %v99_v39  ;;  %v310_v46 = vld [vmem:[%s1336_s1 + $0x80] sm:$0xff]  ;;  %v311_v49 = vld [vmem:[%s1336_s1 + $0x88] sm:$0xff] }
  0x9f   :  { %v100_v51 = vrot.slane %v52_v47, %v99_v39 }
  0xa0   :  { %v121_v55 = vsel %vm101_vm3, %v120_v50, %v116_v52  ;;  %v312_v50 = vld [vmem:[%s1336_s1 + $0x90] sm:$0xff] }
  0xa1   :  { %v102_v54 = vsel %vm101_vm3, %v100_v51, %v95_v53  ;;  %v313_v53 = vld [vmem:[%s1336_s1 + $0x98] sm:$0xff]  ;;  %s1083_s1 = smov [#allocation2]  }
  0xa2   :  { %v123_v56 = vsel %vm122_vm4, %v121_v55, %v102_v54  ;;  %s819_s9 = sshll.u32 %s1083_s1, 4  ;;  %s820_s9 = int_to_ptr.vmem [resolvable:$true] %s819_s9 }
  0xa3   :  { %943 = vmatmul.mubr.msk.f32.vlgmr.msra.gmra.mrb[0].mxu0 %vm124_vm5, %v123_v56  ;;  %s1056_s10 = scalar_lea.vmem %s820_s9, 5120  ;;  %p1061_p1 = scmp.lt.s32.totalorder %s820_s9, %s820_s9 }
  0xa4   :  { %1043 = vmatpush3.bf16.msra.mxu0 %v1040_v8  ;;  %p1057_p0 = scmp.ne.s32.totalorder %s820_s9, %s1056_s10  ;;  %p1062_p2 = scmp.lt.s32.totalorder %s1056_s10, %s1056_s10 }
  0xa5   :  { %1045 = vmatprep.subr.bf16.mxu0 %v1044_v10 }
  0xa6   :  { %p1063_p3 = por %p1062_p2, %p1061_p1 }
  0xa8   :  { %1047 = vmatpush3.bf16.msra.mxu0 %v1044_v10  ;;  %p1064_p4 = pnand %p1063_p3, %p1057_p0 }
 0x176   :  { %v193_v59 = vpop.f32.mrb[0].mxu0 }
 0x177   :  { %v194_v60 = vadd.f32 %v830_v58, %v193_v59  ;;  %v944_v61 = vpop.f32.mrb[1].mxu0 }
 0x179   :  { %1054 = vtanh.f32 %v194_v60 }
 0x183   :  { %v1055_v62 = vpop.eup %1054 }
 0x184   :  { %948 = vmatmul.mubr.msk.f32.vlgmr.msra.gmra.mrb[0].mxu1 %vm206_vm7, %v1055_v62 }
 0x185   :  { %1035 = vmatpush3.bf16.msra.mxu1 %v1032_v63 }
 0x186   :  { %1037 = vmatprep.subr.bf16.mxu1 %v1036_v9 }
 0x189   :  { %1039 = vmatpush3.bf16.msra.mxu1 %v1036_v9 }
 0x257   :  { %v280_v3 = vpop.f32.mrb[0].mxu1 }
 0x258   :  { %v281_v0 = vadd.f32 %v832_v1, %v280_v3  ;;  %v949_v2 = vpop.f32.mrb[1].mxu1 }
 0x25a   :  { %v285_v11 = vsel %vm284_vm8, %v281_v0, 0.0 }
 0x25b   :  { %v286_v12 = vrot.slane %v285_v11, 4 }
 0x25d   :  { %v287_v13 = vadd.f32 %v286_v12, %v285_v11 }
 0x25f   :  { %v288_v14 = vrot.slane %v287_v13, 2 }
 0x261   :  { %v289_v5 = vadd.f32 %v288_v14, %v287_v13 }
 0x263   :  { %v290_v7 = vrot.slane %v289_v5, 1 }
 0x265   :  { %v291_v15 = vadd.f32 %v290_v7, %v289_v5 }
 0x267   :  { %v1207_v16 = vmul.f32 0.5, %v291_v15 }
 0x269   :  { %v314_v18 = vmul.f32 %v294_v4, %v1207_v16  ;;  %v315_v19 = vmul.f32 %v295_v6, %v1207_v16  ;;  %v316_v20 = vmul.f32 %v296_v17, %v1207_v16  ;;  %v317_v23 = vmul.f32 %v297_v21, %v1207_v16 }
 0x26a   :  { %v318_v24 = vmul.f32 %v298_v22, %v1207_v16  ;;  %v319_v27 = vmul.f32 %v299_v25, %v1207_v16  ;;  %v320_v28 = vmul.f32 %v300_v26, %v1207_v16  ;;  %v321_v31 = vmul.f32 %v301_v29, %v1207_v16 }
 0x26b   :  { %958 = vmatprep.mubr.msk.f32.mxu1 %vm124_vm5, %v314_v18  ;;  %996 = vmatprep.mubr.msk.f32.mxu0 %vm124_vm5, %v314_v18  ;;  %v322_v32 = vmul.f32 %v302_v30, %v1207_v16  ;;  %v323_v35 = vmul.f32 %v303_v33, %v1207_v16  ;;  %v324_v36 = vmul.f32 %v304_v34, %v1207_v16 }
 0x26c   :  { %959 = vmatmul.mubr.msk.f32.vlgmr.msra.gmra.mrb[2].mxu1 %vm124_vm5, %v315_v19  ;;  %997 = vmatmul.mubr.msk.f32.vlgmr.msra.gmra.mrb[2].mxu0 %vm124_vm5, %v315_v19  ;;  %v325_v39 = vmul.f32 %v305_v37, %v1207_v16  ;;  %v326_v40 = vmul.f32 %v306_v38, %v1207_v16  ;;  %v327_v43 = vmul.f32 %v307_v41, %v1207_v16 }
 0x26d   :  { %961 = vmatprep.mubr.msk.f32.mxu1 %vm124_vm5, %v316_v20  ;;  %999 = vmatprep.mubr.msk.f32.mxu0 %vm124_vm5, %v316_v20  ;;  %v328_v44 = vmul.f32 %v308_v42, %v1207_v16  ;;  %v329_v47 = vmul.f32 %v309_v45, %v1207_v16  ;;  %v330_v48 = vmul.f32 %v310_v46, %v1207_v16 }
 0x26e   :  { %v331_v51 = vmul.f32 %v311_v49, %v1207_v16  ;;  %v332_v52 = vmul.f32 %v312_v50, %v1207_v16  ;;  %v333_v54 = vmul.f32 %v313_v53, %v1207_v16 }
 0x270   :  { %962 = vmatmul.mubr.msk.f32.gmra.mrb[4].mxu1 %vm124_vm5, %v317_v23  ;;  %1000 = vmatmul.mubr.msk.f32.gmra.mrb[4].mxu0 %vm124_vm5, %v317_v23 }
 0x271   :  { %964 = vmatprep.mubr.msk.f32.mxu1 %vm124_vm5, %v318_v24  ;;  %1002 = vmatprep.mubr.msk.f32.mxu0 %vm124_vm5, %v318_v24 }
 0x274   :  { %965 = vmatmul.mubr.msk.f32.gmra.mrb[6].mxu1 %vm124_vm5, %v319_v27  ;;  %1003 = vmatmul.mubr.msk.f32.gmra.mrb[6].mxu0 %vm124_vm5, %v319_v27 }
 0x275   :  { %967 = vmatprep.mubr.msk.f32.mxu1 %vm124_vm5, %v320_v28  ;;  %1005 = vmatprep.mubr.msk.f32.mxu0 %vm124_vm5, %v320_v28 }
 0x278   :  { %968 = vmatmul.mubr.msk.f32.gmra.mrb[8].mxu1 %vm124_vm5, %v321_v31  ;;  %1006 = vmatmul.mubr.msk.f32.gmra.mrb[8].mxu0 %vm124_vm5, %v321_v31 }
 0x279   :  { %970 = vmatprep.mubr.msk.f32.mxu1 %vm124_vm5, %v322_v32  ;;  %1008 = vmatprep.mubr.msk.f32.mxu0 %vm124_vm5, %v322_v32 }
 0x27c   :  { %971 = vmatmul.mubr.msk.f32.gmra.mrb[10].mxu1 %vm124_vm5, %v323_v35  ;;  %1009 = vmatmul.mubr.msk.f32.gmra.mrb[10].mxu0 %vm124_vm5, %v323_v35 }
 0x27d   :  { %973 = vmatprep.mubr.msk.f32.mxu1 %vm124_vm5, %v324_v36  ;;  %1011 = vmatprep.mubr.msk.f32.mxu0 %vm124_vm5, %v324_v36 }
 0x280   :  { %974 = vmatmul.mubr.msk.f32.gmra.mrb[12].mxu1 %vm124_vm5, %v325_v39  ;;  %1012 = vmatmul.mubr.msk.f32.gmra.mrb[12].mxu0 %vm124_vm5, %v325_v39 }
 0x281   :  { %976 = vmatprep.mubr.msk.f32.mxu1 %vm124_vm5, %v326_v40  ;;  %1014 = vmatprep.mubr.msk.f32.mxu0 %vm124_vm5, %v326_v40 }
 0x284   :  { %977 = vmatmul.mubr.msk.f32.gmra.mrb[14].mxu1 %vm124_vm5, %v327_v43  ;;  %1015 = vmatmul.mubr.msk.f32.gmra.mrb[14].mxu0 %vm124_vm5, %v327_v43 }
 0x285   :  { %979 = vmatprep.mubr.msk.f32.mxu1 %vm124_vm5, %v328_v44  ;;  %1017 = vmatprep.mubr.msk.f32.mxu0 %vm124_vm5, %v328_v44 }
 0x288   :  { %980 = vmatmul.mubr.msk.f32.gmra.mrb[16].mxu1 %vm124_vm5, %v329_v47  ;;  %1018 = vmatmul.mubr.msk.f32.gmra.mrb[16].mxu0 %vm124_vm5, %v329_v47 }
 0x289   :  { %982 = vmatprep.mubr.msk.f32.mxu1 %vm124_vm5, %v330_v48  ;;  %1020 = vmatprep.mubr.msk.f32.mxu0 %vm124_vm5, %v330_v48 }
 0x28c   :  { %983 = vmatmul.mubr.msk.f32.gmra.mrb[18].mxu1 %vm124_vm5, %v331_v51  ;;  %1021 = vmatmul.mubr.msk.f32.gmra.mrb[18].mxu0 %vm124_vm5, %v331_v51 }
 0x28d   :  { %985 = vmatprep.mubr.msk.f32.mxu1 %vm124_vm5, %v332_v52  ;;  %1023 = vmatprep.mubr.msk.f32.mxu0 %vm124_vm5, %v332_v52 }
 0x290   :  { %986 = vmatmul.mubr.msk.f32.gmra.mrb[20].mxu1 %vm124_vm5, %v333_v54  ;;  %1024 = vmatmul.mubr.msk.f32.gmra.mrb[20].mxu0 %vm124_vm5, %v333_v54 }
 0x33f   :  { %v960_v55 = vpop.f32.mrb[2].mxu1  ;;  %v998_v56 = vpop.f32.mrb[2].mxu0 }
 0x340   :  { %v564_v57 = vmax.f32 %v960_v55, 0.0  ;;  %v774_v58 = vmax.f32 %v998_v56, 0.0  ;;  %v464_v59 = vpop.f32.mrb[3].mxu1  ;;  %v674_v60 = vpop.f32.mrb[3].mxu0 }
 0x341   :  { %v563_v61 = vmax.f32 %v464_v59, 0.0  ;;  %v773_v62 = vmax.f32 %v674_v60, 0.0 }
 0x342   :  { %584 = vst [vmem:[#allocation2 + $0x8] sm:$0xff] %v564_v57  ;;  %795 = vst [vmem:[#allocation2 + $0xa8] sm:$0xff] %v774_v58 }
 0x343   :  { %583 = vst [vmem:[#allocation2] sm:$0xff] %v563_v61  ;;  %794 = vst [vmem:[#allocation2 + $0xa0] sm:$0xff] %v773_v62  ;;  %v963_v63 = vpop.f32.mrb[4].mxu1  ;;  %v1001_v8 = vpop.f32.mrb[4].mxu0 }
 0x344   :  { %v566_v9 = vmax.f32 %v963_v63, 0.0  ;;  %v776_v10 = vmax.f32 %v1001_v8, 0.0  ;;  %v474_v1 = vpop.f32.mrb[5].mxu1  ;;  %v684_v3 = vpop.f32.mrb[5].mxu0 }
 0x345   :  { %v565_v0 = vmax.f32 %v474_v1, 0.0  ;;  %v775_v2 = vmax.f32 %v684_v3, 0.0 }
 0x346   :  { %586 = vst [vmem:[#allocation2 + $0x18] sm:$0xff] %v566_v9  ;;  %797 = vst [vmem:[#allocation2 + $0xb8] sm:$0xff] %v776_v10 }
 0x347   :  { %585 = vst [vmem:[#allocation2 + $0x10] sm:$0xff] %v565_v0  ;;  %796 = vst [vmem:[#allocation2 + $0xb0] sm:$0xff] %v775_v2  ;;  %v966_v11 = vpop.f32.mrb[6].mxu1  ;;  %v1004_v12 = vpop.f32.mrb[6].mxu0 }
 0x348   :  { %v568_v13 = vmax.f32 %v966_v11, 0.0  ;;  %v778_v14 = vmax.f32 %v1004_v12, 0.0  ;;  %v484_v5 = vpop.f32.mrb[7].mxu1  ;;  %v694_v7 = vpop.f32.mrb[7].mxu0 }
 0x349   :  { %v567_v15 = vmax.f32 %v484_v5, 0.0  ;;  %v777_v4 = vmax.f32 %v694_v7, 0.0 }
 0x34a   :  { %588 = vst [vmem:[#allocation2 + $0x28] sm:$0xff] %v568_v13  ;;  %799 = vst [vmem:[#allocation2 + $0xc8] sm:$0xff] %v778_v14 }
 0x34b   :  { %587 = vst [vmem:[#allocation2 + $0x20] sm:$0xff] %v567_v15  ;;  %798 = vst [vmem:[#allocation2 + $0xc0] sm:$0xff] %v777_v4  ;;  %v969_v6 = vpop.f32.mrb[8].mxu1  ;;  %v1007_v16 = vpop.f32.mrb[8].mxu0 }
 0x34c   :  { %v570_v17 = vmax.f32 %v969_v6, 0.0  ;;  %v780_v18 = vmax.f32 %v1007_v16, 0.0  ;;  %v494_v19 = vpop.f32.mrb[9].mxu1  ;;  %v704_v20 = vpop.f32.mrb[9].mxu0 }
 0x34d   :  { %v569_v21 = vmax.f32 %v494_v19, 0.0  ;;  %v779_v22 = vmax.f32 %v704_v20, 0.0 }
 0x34e   :  { %590 = vst [vmem:[#allocation2 + $0x38] sm:$0xff] %v570_v17  ;;  %801 = vst [vmem:[#allocation2 + $0xd8] sm:$0xff] %v780_v18 }
 0x34f   :  { %589 = vst [vmem:[#allocation2 + $0x30] sm:$0xff] %v569_v21  ;;  %800 = vst [vmem:[#allocation2 + $0xd0] sm:$0xff] %v779_v22  ;;  %v972_v23 = vpop.f32.mrb[10].mxu1  ;;  %v1010_v24 = vpop.f32.mrb[10].mxu0 }
 0x350   :  { %v572_v25 = vmax.f32 %v972_v23, 0.0  ;;  %v782_v26 = vmax.f32 %v1010_v24, 0.0  ;;  %v504_v27 = vpop.f32.mrb[11].mxu1  ;;  %v714_v28 = vpop.f32.mrb[11].mxu0 }
 0x351   :  { %v571_v29 = vmax.f32 %v504_v27, 0.0  ;;  %v781_v30 = vmax.f32 %v714_v28, 0.0 }
 0x352   :  { %592 = vst [vmem:[#allocation2 + $0x48] sm:$0xff] %v572_v25  ;;  %803 = vst [vmem:[#allocation2 + $0xe8] sm:$0xff] %v782_v26 }
 0x353   :  { %591 = vst [vmem:[#allocation2 + $0x40] sm:$0xff] %v571_v29  ;;  %802 = vst [vmem:[#allocation2 + $0xe0] sm:$0xff] %v781_v30  ;;  %v975_v31 = vpop.f32.mrb[12].mxu1  ;;  %v1013_v32 = vpop.f32.mrb[12].mxu0 }
 0x354   :  { %v574_v33 = vmax.f32 %v975_v31, 0.0  ;;  %v784_v34 = vmax.f32 %v1013_v32, 0.0  ;;  %v514_v35 = vpop.f32.mrb[13].mxu1  ;;  %v724_v36 = vpop.f32.mrb[13].mxu0 }
 0x355   :  { %v573_v37 = vmax.f32 %v514_v35, 0.0  ;;  %v783_v38 = vmax.f32 %v724_v36, 0.0 }
 0x356   :  { %594 = vst [vmem:[#allocation2 + $0x58] sm:$0xff] %v574_v33  ;;  %805 = vst [vmem:[#allocation2 + $0xf8] sm:$0xff] %v784_v34 }
 0x357   :  { %593 = vst [vmem:[#allocation2 + $0x50] sm:$0xff] %v573_v37  ;;  %804 = vst [vmem:[#allocation2 + $0xf0] sm:$0xff] %v783_v38  ;;  %v978_v39 = vpop.f32.mrb[14].mxu1  ;;  %v1016_v40 = vpop.f32.mrb[14].mxu0 }
 0x358   :  { %v576_v41 = vmax.f32 %v978_v39, 0.0  ;;  %v786_v42 = vmax.f32 %v1016_v40, 0.0  ;;  %v524_v43 = vpop.f32.mrb[15].mxu1  ;;  %v734_v44 = vpop.f32.mrb[15].mxu0 }
 0x359   :  { %v575_v45 = vmax.f32 %v524_v43, 0.0  ;;  %v785_v46 = vmax.f32 %v734_v44, 0.0 }
 0x35a   :  { %596 = vst [vmem:[#allocation2 + $0x68] sm:$0xff] %v576_v41  ;;  %807 = vst [vmem:[#allocation2 + $0x108] sm:$0xff] %v786_v42 }
 0x35b   :  { %595 = vst [vmem:[#allocation2 + $0x60] sm:$0xff] %v575_v45  ;;  %806 = vst [vmem:[#allocation2 + $0x100] sm:$0xff] %v785_v46  ;;  %v981_v47 = vpop.f32.mrb[16].mxu1  ;;  %v1019_v48 = vpop.f32.mrb[16].mxu0 }
 0x35c   :  { %v578_v49 = vmax.f32 %v981_v47, 0.0  ;;  %v788_v50 = vmax.f32 %v1019_v48, 0.0  ;;  %v534_v51 = vpop.f32.mrb[17].mxu1  ;;  %v744_v52 = vpop.f32.mrb[17].mxu0 }
 0x35d   :  { %v577_v53 = vmax.f32 %v534_v51, 0.0  ;;  %v787_v54 = vmax.f32 %v744_v52, 0.0 }
 0x35e   :  { %598 = vst [vmem:[#allocation2 + $0x78] sm:$0xff] %v578_v49  ;;  %809 = vst [vmem:[#allocation2 + $0x118] sm:$0xff] %v788_v50 }
 0x35f   :  { %597 = vst [vmem:[#allocation2 + $0x70] sm:$0xff] %v577_v53  ;;  %808 = vst [vmem:[#allocation2 + $0x110] sm:$0xff] %v787_v54  ;;  %v984_v55 = vpop.f32.mrb[18].mxu1  ;;  %v1022_v56 = vpop.f32.mrb[18].mxu0 }
 0x360   :  { %v580_v57 = vmax.f32 %v984_v55, 0.0  ;;  %v790_v58 = vmax.f32 %v1022_v56, 0.0  ;;  %v544_v59 = vpop.f32.mrb[19].mxu1  ;;  %v754_v60 = vpop.f32.mrb[19].mxu0 }
 0x361   :  { %v579_v61 = vmax.f32 %v544_v59, 0.0  ;;  %v789_v62 = vmax.f32 %v754_v60, 0.0 }
 0x362   :  { %600 = vst [vmem:[#allocation2 + $0x88] sm:$0xff] %v580_v57  ;;  %811 = vst [vmem:[#allocation2 + $0x128] sm:$0xff] %v790_v58 }
 0x363   :  { %599 = vst [vmem:[#allocation2 + $0x80] sm:$0xff] %v579_v61  ;;  %810 = vst [vmem:[#allocation2 + $0x120] sm:$0xff] %v789_v62  ;;  %v987_v63 = vpop.f32.mrb[20].mxu1  ;;  %v1025_v8 = vpop.f32.mrb[20].mxu0 }
 0x364   :  { %v582_v9 = vmax.f32 %v987_v63, 0.0  ;;  %v792_v10 = vmax.f32 %v1025_v8, 0.0  ;;  %v554_v1 = vpop.f32.mrb[21].mxu1  ;;  %v764_v3 = vpop.f32.mrb[21].mxu0 }
 0x365   :  { %v581_v0 = vmax.f32 %v554_v1, 0.0  ;;  %v791_v2 = vmax.f32 %v764_v3, 0.0 }
 0x366   :  { %602 = vst [vmem:[#allocation2 + $0x98] sm:$0xff] %v582_v9  ;;  %813 = vst [vmem:[#allocation2 + $0x138] sm:$0xff] %v792_v10 }
 0x367   :  { %601 = vst [vmem:[#allocation2 + $0x90] sm:$0xff] %v581_v0  ;;  %812 = vst [vmem:[#allocation2 + $0x130] sm:$0xff] %v791_v2 }
 0x368   :  { %1067 = shalt.err (!%p1064_p4)
}
 0x369   :  { %s1068_s13 = scalar_lea.hbm %s1341_s6, 5120 }
 0x36a   :  { %p1069_p5 = scmp.ne.s32.totalorder %s1341_s6, %s1068_s13  ;;  %p1072_p6 = scmp.lt.u32.totalorder %s1068_s13, %s1341_s6 }
 0x36c   :  { %p1074_p7 = pnand %p1072_p6, %p1069_p5 }
 0x36e   :  { %1077 = shalt.err (!%p1074_p7)
}
 0x36f   :  { %s1084_s0 = smov 128   ;;  %s1085_s18 = smov 8  }
 0x370   :  { %825 = dma.vmem_to_hbm [thread:$0]  %s820_s9, 5120, %s1341_s6, [#allocation3], %s1084_s0, %s1084_s0, %s1085_s18  }
 0x371   :  { %1078 = dma.done.wait [#allocation3], 5120  }
 0x372   :  { %1079 = vsyncadd [#allocation3], 4294962176 }
 0x373   :  { %829 = vsyncpa [#allocation3], 1 }

</bundles_post_ra>
